<compile_context>
chip_gen: v7x
topology: tpu7x:2x2x1
jax: 0.10.0
libtpu: 0.0.40
codegen_flags: <defaults>
</compile_context>

<pallas_src>
import jax
import jax.numpy as jnp
from jax.experimental import pallas as pl
from jax.experimental.pallas import tpu as pltpu


def _round_up(v, m):
    return ((v + m - 1) // m) * m


# ---------------------------------------------------------------------------
# Kernel body (fixed, static layer structure)
# ---------------------------------------------------------------------------
def _make_fused_kernel(num_layers, padded_ns):
    def kernel(x_ref, *rest):
        w_refs = rest[:num_layers]
        o_ref = rest[num_layers]

        h = x_ref[...]
        for l in range(num_layers):
            n = padded_ns[l]                       # multiple of 128 -> aligned split
            w = w_refs[l][...]                     # [K_pad, 2*N_pad] = [W_r | W_i]
            # Cast activations to the weight dtype AFTER load (bf16 path stays
            # in-VMEM; default f32 path is a no-op).  f32 accumulation on MXU.
            z = jnp.dot(h.astype(w.dtype), w,
                        preferred_element_type=jnp.float32)
            real = z[:, :n]                        # vreg-boundary slices (n % 128 == 0)
            imag = z[:, n:]
            p = real * real + imag * imag          # >= 0, hidden relu is a no-op
            if l == num_layers - 1:
                # Final Born layer: per-row normalization. Padded columns are
                # exactly 0 so they do not perturb the row sum.  Exact
                # reciprocal: the kernel is DMA/overhead bound, so this is free
                # and keeps row sums at f32 accuracy.  (All-zero rows -> NaN,
                # matching the reference; padded tail-tile rows are discarded.)
                denom = jnp.sum(p, axis=1, keepdims=True)
                p = p * pl.reciprocal(denom, approx=False)
            h = p
        o_ref[...] = h.astype(o_ref.dtype)

    return kernel


# ---------------------------------------------------------------------------
# One-time weight prep: fuse + lane-pad (hoisted out of the per-call wrapper)
# ---------------------------------------------------------------------------
def pack_born_weights(weights, compute_dtype=jnp.float32):
    """Fuse each layer's (W_real, W_imag) into one [K_pad, 2*N_pad] operand.

    N is zero-padded to a multiple of 128; the next layer's K is padded to the
    previous layer's N_pad (zero rows).  Zero pads square to zero, so the
    forward result (including the Born row normalization) is unchanged.
    """
    packed, raw_ns, padded_ns = [], [], []
    k_expected = weights[0][0].shape[0]
    k_pad = k_expected                       # first-layer K stays at the raw input width
    for wr, wi in weights:
        k, n = wr.shape
        assert k == k_expected and wi.shape == (k, n)
        n_pad = _round_up(n, 128)
        wcat = jnp.zeros((k_pad, 2 * n_pad), dtype=compute_dtype)
        wcat = wcat.at[:k, :n].set(wr.astype(compute_dtype))
        wcat = wcat.at[:k, n_pad:n_pad + n].set(wi.astype(compute_dtype))
        packed.append(wcat)
        raw_ns.append(n)
        padded_ns.append(n_pad)
        k_expected, k_pad = n, n_pad
    return packed, tuple(raw_ns), tuple(padded_ns)


# ---------------------------------------------------------------------------
# Batch-tile sizing: VMEM-budget derived, no forced multi-step split
# ---------------------------------------------------------------------------
def _choose_tile_b(batch, d_in, padded_ns, x_itemsize=4,
                   vmem_budget_bytes=16 << 20):
    """Pick the largest batch tile that fits a conservative VMEM budget
    (16 MiB = v5e scoped default), capped at 4096 rows.  No forced >=2-step
    split: single-TC chips (v5e/v6e) prefer one big tile; on v7x the grid only
    splits when the batch itself provides multiple large tiles per core."""
    # Double-buffered input & output blocks + per-layer live intermediates (f32).
    io_per_row = 2 * (x_itemsize * d_in + 4 * padded_ns[-1])
    inter_per_row = 4 * sum(2 * n for n in padded_ns)       # z tiles per layer
    per_row = io_per_row + inter_per_row
    tile = vmem_budget_bytes // max(per_row, 1)
    tile = max(16, min(tile, 4096, batch))
    sublane = 16 if x_itemsize < 4 else 8                   # bf16 packs 16 rows/vreg
    return _round_up(tile, sublane)


# ---------------------------------------------------------------------------
# Fused forward pass
# ---------------------------------------------------------------------------
def multilayer_born_forward(x, packed_weights, raw_ns, padded_ns, *, tile_b=None):
    """Fused forward: one pallas_call, tiled only over batch.  Each fused,
    lane-padded weight has a constant block index so it stays VMEM-resident
    across the whole batch grid.  The kernel writes a lane-dense (N_pad-wide)
    output block; the wrapper slices back to the true n_out."""
    B, d_in = x.shape
    num_layers = len(packed_weights)
    n_out, n_out_pad = raw_ns[-1], padded_ns[-1]

    if tile_b is None:
        tile_b = _choose_tile_b(B, d_in, padded_ns,
                                x_itemsize=jnp.dtype(x.dtype).itemsize)
    grid = (pl.cdiv(B, tile_b),)

    in_specs = [pl.BlockSpec((tile_b, d_in), lambda i: (i, 0))]
    for w in packed_weights:
        # Full fused weight, constant index map: fetched once, VMEM-resident.
        in_specs.append(pl.BlockSpec(w.shape, lambda i: (0, 0)))

    kernel = _make_fused_kernel(num_layers, padded_ns)
    out_padded = pl.pallas_call(
        kernel,
        out_shape=jax.ShapeDtypeStruct((B, n_out_pad), jnp.float32),
        grid_spec=pltpu.PrefetchScalarGridSpec(
            num_scalar_prefetch=0,
            grid=grid,
            in_specs=in_specs,
            out_specs=pl.BlockSpec((tile_b, n_out_pad), lambda i: (i, 0)),
        ),
        compiler_params=pltpu.CompilerParams(
            dimension_semantics=("parallel",),
        ),
    )(x, *packed_weights)
    return out_padded[:, :n_out]


# ---------------------------------------------------------------------------
# Plain-JAX reference + deterministic init
# ---------------------------------------------------------------------------
def multilayer_born_reference(x, weights):
    """Plain-JAX reference mirroring the PyTorch forward."""
    n = len(weights)
    for li, (wr, wi) in enumerate(weights):
        real = x @ wr
        imag = x @ wi
        p = real ** 2 + imag ** 2
        if li == n - 1:
            p = p / jnp.sum(p, axis=1, keepdims=True)
        else:
            p = jnp.maximum(p, 0.0)                  # torch.relu (no-op on p >= 0)
        x = p
    return x


def init_weights(key, layer_sizes):
    """Deterministic init: each layer weight has shape [2, in, out] (real/imag)."""
    weights = []
    for i in range(len(layer_sizes) - 1):
        key, sub = jax.random.split(key)
        fan_in, fan_out = layer_sizes[i], layer_sizes[i + 1]
        w = jax.random.uniform(
            sub, (2, fan_in, fan_out), dtype=jnp.float32,
            minval=0.0, maxval=1.0,
        ) / jnp.sqrt(jnp.float32(fan_in))
        weights.append((w[0], w[1]))
    return weights


if __name__ == "__main__":
    key = jax.random.PRNGKey(0)
    layer_sizes = [32, 64, 16]      # two LogitsBornLayer matmuls + final Born
    batch = 256

    kx, kw = jax.random.split(key)
    x = jax.random.uniform(kx, (batch, layer_sizes[0]), dtype=jnp.float32)
    weights = init_weights(kw, layer_sizes)

    # One-time weight prep (fuse real/imag, lane-pad N to 128).
    packed, raw_ns, padded_ns = pack_born_weights(weights)

    out = multilayer_born_forward(x, packed, raw_ns, padded_ns)
    out = jax.block_until_ready(out)

    ref = multilayer_born_reference(x, weights)
    assert out.shape == (batch, layer_sizes[-1])
    # Exact reciprocal + f32 accumulation: only MXU multiply-precision drift left.
    assert jnp.allclose(out, ref, atol=1e-5, rtol=5e-3), "mismatch vs reference"
    # Final Born layer rows are probabilities.
    assert jnp.allclose(jnp.sum(out, axis=1), 1.0, atol=1e-5)

    print("KERNEL_OK")
</pallas_src>

<mosaic_0001>
module attributes {stable_mosaic.version = 11 : i64} {
  func.func @kernel(%arg0: i32, %arg1: memref<256x32xf32, #tpu.memory_space<vmem>>, %arg2: memref<32x256xf32, #tpu.memory_space<vmem>>, %arg3: memref<128x256xf32, #tpu.memory_space<vmem>>, %arg4: memref<256x128xf32, #tpu.memory_space<vmem>>) attributes {dimension_semantics = [#tpu.dimension_semantics<parallel>], iteration_bounds = array<i64: 1>, scalar_prefetch = 0 : i64, scratch_operands = 0 : i64, tpu.core_type = #tpu.core_type<tc>, window_params = [{transform_indices = @transform_0, window_bounds = array<i64: 256, 32>}, {pipeline_mode = #tpu.pipeline_mode<synchronous>, transform_indices = @transform_1, window_bounds = array<i64: 32, 256>}, {pipeline_mode = #tpu.pipeline_mode<synchronous>, transform_indices = @transform_2, window_bounds = array<i64: 128, 256>}, {transform_indices = @transform_3, window_bounds = array<i64: 256, 128>}]} {
    %c0 = arith.constant 0 : index
    %c0_0 = arith.constant 0 : index
    %0 = vector.load %arg1[%c0, %c0_0] : memref<256x32xf32, #tpu.memory_space<vmem>>, vector<256x32xf32>
    %c0_1 = arith.constant 0 : index
    %c0_2 = arith.constant 0 : index
    %1 = vector.load %arg2[%c0_1, %c0_2] : memref<32x256xf32, #tpu.memory_space<vmem>>, vector<32x256xf32>
    %cst = arith.constant dense<0.000000e+00> : vector<256x256xf32>
    %2 = tpu.matmul %0, %1, %cst {dimension_numbers = #tpu.dot_dimension_numbers<[1], [0], [0], [1], [0, 0, 1, 1], [], []>} : vector<256x32xf32>, vector<32x256xf32>, vector<256x256xf32> -> vector<256x256xf32>
    %3 = vector.extract_strided_slice %2 {offsets = [0, 0], sizes = [256, 128], strides = [1, 1]} : vector<256x256xf32> to vector<256x128xf32>
    %4 = vector.extract_strided_slice %2 {offsets = [0, 128], sizes = [256, 128], strides = [1, 1]} : vector<256x256xf32> to vector<256x128xf32>
    %5 = arith.mulf %3, %3 : vector<256x128xf32>
    %6 = arith.mulf %4, %4 : vector<256x128xf32>
    %7 = arith.addf %5, %6 : vector<256x128xf32>
    %c0_3 = arith.constant 0 : index
    %c0_4 = arith.constant 0 : index
    %8 = vector.load %arg3[%c0_3, %c0_4] : memref<128x256xf32, #tpu.memory_space<vmem>>, vector<128x256xf32>
    %cst_5 = arith.constant dense<0.000000e+00> : vector<256x256xf32>
    %9 = tpu.matmul %7, %8, %cst_5 {dimension_numbers = #tpu.dot_dimension_numbers<[1], [0], [0], [1], [0, 0, 1, 1], [], []>} : vector<256x128xf32>, vector<128x256xf32>, vector<256x256xf32> -> vector<256x256xf32>
    %10 = vector.extract_strided_slice %9 {offsets = [0, 0], sizes = [256, 128], strides = [1, 1]} : vector<256x256xf32> to vector<256x128xf32>
    %11 = vector.extract_strided_slice %9 {offsets = [0, 128], sizes = [256, 128], strides = [1, 1]} : vector<256x256xf32> to vector<256x128xf32>
    %12 = arith.mulf %10, %10 : vector<256x128xf32>
    %13 = arith.mulf %11, %11 : vector<256x128xf32>
    %14 = arith.addf %12, %13 : vector<256x128xf32>
    %cst_6 = arith.constant dense<0.000000e+00> : vector<256xf32>
    %15 = vector.multi_reduction <add>, %14, %cst_6 [1] : vector<256x128xf32> to vector<256xf32>
    %16 = vector.shape_cast %15 : vector<256xf32> to vector<256x1xf32>
    %17 = tpu.reciprocal %16 : vector<256x1xf32> -> vector<256x1xf32>
    %18 = vector.broadcast %17 : vector<256x1xf32> to vector<256x128xf32>
    %19 = arith.mulf %14, %18 : vector<256x128xf32>
    %c0_7 = arith.constant 0 : index
    %c0_8 = arith.constant 0 : index
    %20 = vector.load %arg4[%c0_7, %c0_8] : memref<256x128xf32, #tpu.memory_space<vmem>>, vector<256x128xf32>
    tpu.vector_store %arg4[%c0_7, %c0_8], %19 {strides = array<i32>} : memref<256x128xf32, #tpu.memory_space<vmem>>, vector<256x128xf32>,
    return
  }
  func.func @transform_0(%arg0: i32) -> (i32, i32) {
    %c0_i32 = arith.constant 0 : i32
    %c0_i32_0 = arith.constant 0 : i32
    return %arg0, %c0_i32 : i32, i32
  }
  func.func @transform_1(%arg0: i32) -> (i32, i32) {
    %c0_i32 = arith.constant 0 : i32
    %c0_i32_0 = arith.constant 0 : i32
    %c0_i32_1 = arith.constant 0 : i32
    return %c0_i32, %c0_i32_0 : i32, i32
  }
  func.func @transform_2(%arg0: i32) -> (i32, i32) {
    %c0_i32 = arith.constant 0 : i32
    %c0_i32_0 = arith.constant 0 : i32
    %c0_i32_1 = arith.constant 0 : i32
    return %c0_i32, %c0_i32_0 : i32, i32
  }
  func.func @transform_3(%arg0: i32) -> (i32, i32) {
    %c0_i32 = arith.constant 0 : i32
    %c0_i32_0 = arith.constant 0 : i32
    return %arg0, %c0_i32 : i32, i32
  }
}

</mosaic_0001>

<bundles_post_ra>
// kernel: tpu_custom_call.1
= control target key start
LH: loop header
LB: loop body
LE: loop exit
PB: predicated region body
PF: predicated region fallthrough
CT: control target
= control target key end

     0   :  { %v1246_v7 = vmov 0.0   ;;  %vm55_vm0 = vcmask 261120   ;;  %s1722_s0 = inlined_call_operand.vmem [shape: f32[256,32], index: 0, kind: input, shape index: {}]   ;;  %s1723_s1 = inlined_call_operand.vmem [shape: f32[32,256], index: 1, kind: input, shape index: {}]   ;;  %s1724_s2 = inlined_call_operand.vmem [shape: f32[128,256], index: 2, kind: input, shape index: {}]   ;;  %s1725_s3 = inlined_call_operand.hbm [shape: f32[256,128], index: 3, kind: output, shape index: {}]  }
   0x1   :  { %v48_v0 = vld [vmem:[%s1723_s1 + $0x8] sm:$0xff]  ;;  %v50_v1 = vld [vmem:[%s1723_s1 + $0x18] sm:$0xff]  ;;  %v47_v2 = vld [vmem:[%s1723_s1] sm:$0xff]  ;;  %216 = vmatprep.mubr.f32.mxu0 %v1246_v7  ;;  %619 = vmatprep.mubr.f32.mxu1 %v1246_v7 }
   0x2   :  { %v1098_v3 = vpack.c.bf16 %v50_v1, %v48_v0  ;;  %v49_v4 = vld [vmem:[%s1723_s1 + $0x10] sm:$0xff]  ;;  %v52_v5 = vld [vmem:[%s1723_s1 + $0x28] sm:$0xff]  ;;  %v54_v6 = vld [vmem:[%s1723_s1 + $0x38] sm:$0xff] }
   0x3   :  { %v1100_v8 = vpack.c.bf16 %v49_v4, %v47_v2  ;;  %v1102_v9 = vpack.c.bf16 %v54_v6, %v52_v5  ;;  %v51_v10 = vld [vmem:[%s1723_s1 + $0x20] sm:$0xff]  ;;  %v53_v11 = vld [vmem:[%s1723_s1 + $0x30] sm:$0xff]  ;;  %v16_v14 = vld [vmem:[%s1722_s0 + $0x8] sm:$0xff] }
   0x4   :  { %1099 = vmatprep.subr.bf16.mxu0 %v1098_v3  ;;  %v1104_v12 = vpack.c.bf16 %v53_v11, %v51_v10  ;;  %v15_v13 = vld [vmem:[%s1722_s0] sm:$0xff]  ;;  %v506_v15 = vld [vmem:[%s1724_s2 + $0x8] sm:$0xff]  ;;  %v508_v16 = vld [vmem:[%s1724_s2 + $0x18] sm:$0xff] }
   0x5   :  { %1101 = vmatpush1.bf16.msra.mxu0 %v1100_v8  ;;  %v1106_v17 = vpack.c.bf16 %v508_v16, %v506_v15  ;;  %v505_v18 = vld [vmem:[%s1724_s2] sm:$0xff]  ;;  %v507_v19 = vld [vmem:[%s1724_s2 + $0x10] sm:$0xff]  ;;  %v510_v20 = vld [vmem:[%s1724_s2 + $0x28] sm:$0xff] }
   0x6   :  { %1103 = vmatprep.subr.bf16.mxu0 %v1102_v9  ;;  %v1108_v21 = vpack.c.bf16 %v507_v19, %v505_v18  ;;  %v512_v22 = vld [vmem:[%s1724_s2 + $0x38] sm:$0xff]  ;;  %v509_v23 = vld [vmem:[%s1724_s2 + $0x20] sm:$0xff]  ;;  %v511_v24 = vld [vmem:[%s1724_s2 + $0x30] sm:$0xff] }
   0x7   :  { %v17_v25 = vld [vmem:[%s1722_s0 + $0x10] sm:$0xff]  ;;  %v1110_v26 = vpack.c.bf16 %v512_v22, %v510_v20  ;;  %v514_v27 = vld [vmem:[%s1724_s2 + $0x48] sm:$0xff]  ;;  %v516_v28 = vld [vmem:[%s1724_s2 + $0x58] sm:$0xff]  ;;  %v1112_v29 = vpack.c.bf16 %v511_v24, %v509_v23  ;;  %1138 = vmatprep.subr.bf16.mxu1 %v1106_v17 }
   0x8   :  { %v1114_v30 = vpack.c.bf16 %v516_v28, %v514_v27  ;;  %v513_v31 = vld [vmem:[%s1724_s2 + $0x40] sm:$0xff]  ;;  %v515_v32 = vld [vmem:[%s1724_s2 + $0x50] sm:$0xff]  ;;  %1146 = vmatpush1.bf16.msra.mxu1 %v1108_v21  ;;  %v518_v33 = vld [vmem:[%s1724_s2 + $0x68] sm:$0xff] }
   0x9   :  { %1105 = vmatpush1.bf16.msra.mxu0 %v1104_v12  ;;  %v520_v34 = vld [vmem:[%s1724_s2 + $0x78] sm:$0xff]  ;;  %1139 = vmatprep.subr.bf16.mxu1 %v1110_v26  ;;  %v1116_v36 = vpack.c.bf16 %v515_v32, %v513_v31  ;;  %v517_v38 = vld [vmem:[%s1724_s2 + $0x60] sm:$0xff]  ;;  %v519_v39 = vld [vmem:[%s1724_s2 + $0x70] sm:$0xff] }
   0xa   :  { %1107 = vmatprep.subr.bf16.mxu0 %v1106_v17  ;;  %v18_v35 = vld [vmem:[%s1722_s0 + $0x18] sm:$0xff]  ;;  %v1118_v37 = vpack.c.bf16 %v520_v34, %v518_v33 }
   0xc   :  { %1066 = vmatmul.mubr.msk.f32.vlgmr.msra.gmra.mrb[0].mxu0 %vm55_vm0, %v15_v13  ;;  %1147 = vmatpush1.bf16.msra.mxu1 %v1112_v29 }
   0xd   :  { %222 = vmatprep.mubr.f32.mxu0 %v1246_v7  ;;  %1109 = vmatpush1.bf16.msra.mxu0 %v1108_v21 }
   0xe   :  { %1111 = vmatprep.subr.bf16.mxu0 %v1110_v26 }
  0x10   :  { %1067 = vmatmul.mubr.msk.f32.gmra.mrb[2].mxu0 %vm55_vm0, %v16_v14 }
  0x11   :  { %228 = vmatprep.mubr.f32.mxu0 %v1246_v7  ;;  %1113 = vmatpush1.bf16.msra.mxu0 %v1112_v29 }
  0x12   :  { %1115 = vmatprep.subr.bf16.mxu0 %v1114_v30 }
  0x14   :  { %1068 = vmatmul.mubr.msk.f32.gmra.mrb[4].mxu0 %vm55_vm0, %v17_v25 }
  0x15   :  { %234 = vmatprep.mubr.f32.mxu0 %v1246_v7 }
  0x16   :  { %8 = vsyncpa [#allocation3], 0  ;;  %v522_v40 = vld [vmem:[%s1724_s2 + $0x88] sm:$0xff]  ;;  %v524_v41 = vld [vmem:[%s1724_s2 + $0x98] sm:$0xff]  ;;  %1140 = vmatprep.subr.bf16.mxu1 %v1114_v30  ;;  %1117 = vmatpush1.bf16.msra.mxu0 %v1116_v36  ;;  %v1120_v43 = vpack.c.bf16 %v519_v39, %v517_v38 }
  0x17   :  { %v19_v42 = vld [vmem:[%s1722_s0 + $0x20] sm:$0xff]  ;;  %1119 = vmatprep.subr.bf16.mxu0 %v1118_v37  ;;  %v1122_v44 = vpack.c.bf16 %v524_v41, %v522_v40  ;;  %v523_v46 = vld [vmem:[%s1724_s2 + $0x90] sm:$0xff]  ;;  %1148 = vmatpush1.bf16.msra.mxu1 %v1116_v36  ;;  %v526_v47 = vld [vmem:[%s1724_s2 + $0xa8] sm:$0xff] }
  0x18   :  { %1069 = vmatmul.mubr.msk.f32.gmra.mrb[6].mxu0 %vm55_vm0, %v18_v35  ;;  %v521_v45 = vld [vmem:[%s1724_s2 + $0x80] sm:$0xff]  ;;  %v528_v48 = vld [vmem:[%s1724_s2 + $0xb8] sm:$0xff]  ;;  %1141 = vmatprep.subr.bf16.mxu1 %v1118_v37  ;;  %v20_v49 = vld [vmem:[%s1722_s0 + $0x28] sm:$0xff] }
  0x19   :  { %240 = vmatprep.mubr.f32.mxu0 %v1246_v7  ;;  %v1124_v50 = vpack.c.bf16 %v523_v46, %v521_v45  ;;  %v1126_v51 = vpack.c.bf16 %v528_v48, %v526_v47  ;;  %v525_v52 = vld [vmem:[%s1724_s2 + $0xa0] sm:$0xff]  ;;  %v527_v53 = vld [vmem:[%s1724_s2 + $0xb0] sm:$0xff]  ;;  %v530_v54 = vld [vmem:[%s1724_s2 + $0xc8] sm:$0xff] }
  0x1a   :  { %1121 = vmatpush1.bf16.msra.mxu0 %v1120_v43  ;;  %v532_v55 = vld [vmem:[%s1724_s2 + $0xd8] sm:$0xff]  ;;  %v21_v56 = vld [vmem:[%s1722_s0 + $0x30] sm:$0xff]  ;;  %v1128_v57 = vpack.c.bf16 %v527_v53, %v525_v52  ;;  %v529_v59 = vld [vmem:[%s1724_s2 + $0xc0] sm:$0xff] }
  0x1b   :  { %1123 = vmatprep.subr.bf16.mxu0 %v1122_v44  ;;  %1149 = vmatpush1.bf16.msra.mxu1 %v1120_v43  ;;  %v1130_v58 = vpack.c.bf16 %v532_v55, %v530_v54  ;;  %v531_v60 = vld [vmem:[%s1724_s2 + $0xd0] sm:$0xff]  ;;  %v22_v61 = vld [vmem:[%s1722_s0 + $0x38] sm:$0xff]  ;;  %v23_v63 = vld [vmem:[%s1722_s0 + $0x40] sm:$0xff] }
  0x1c   :  { %1070 = vmatmul.mubr.msk.f32.gmra.mrb[8].mxu0 %vm55_vm0, %v19_v42  ;;  %1142 = vmatprep.subr.bf16.mxu1 %v1122_v44  ;;  %v1132_v62 = vpack.c.bf16 %v531_v60, %v529_v59  ;;  %v24_v0 = vld [vmem:[%s1722_s0 + $0x48] sm:$0xff]  ;;  %v25_v1 = vld [vmem:[%s1722_s0 + $0x50] sm:$0xff]  ;;  %v26_v2 = vld [vmem:[%s1722_s0 + $0x58] sm:$0xff] }
  0x1d   :  { %246 = vmatprep.mubr.f32.mxu0 %v1246_v7  ;;  %v27_v3 = vld [vmem:[%s1722_s0 + $0x60] sm:$0xff]  ;;  %v28_v4 = vld [vmem:[%s1722_s0 + $0x68] sm:$0xff]  ;;  %v29_v5 = vld [vmem:[%s1722_s0 + $0x70] sm:$0xff] }
  0x1e   :  { %1125 = vmatpush1.bf16.msra.mxu0 %v1124_v50  ;;  %v30_v6 = vld [vmem:[%s1722_s0 + $0x78] sm:$0xff]  ;;  %v31_v8 = vld [vmem:[%s1722_s0 + $0x80] sm:$0xff]  ;;  %v32_v9 = vld [vmem:[%s1722_s0 + $0x88] sm:$0xff] }
  0x1f   :  { %1127 = vmatprep.subr.bf16.mxu0 %v1126_v51  ;;  %1150 = vmatpush1.bf16.msra.mxu1 %v1124_v50  ;;  %v33_v10 = vld [vmem:[%s1722_s0 + $0x90] sm:$0xff]  ;;  %v34_v11 = vld [vmem:[%s1722_s0 + $0x98] sm:$0xff]  ;;  %v35_v12 = vld [vmem:[%s1722_s0 + $0xa0] sm:$0xff] }
  0x20   :  { %1071 = vmatmul.mubr.msk.f32.gmra.mrb[10].mxu0 %vm55_vm0, %v20_v49  ;;  %1143 = vmatprep.subr.bf16.mxu1 %v1126_v51  ;;  %v36_v13 = vld [vmem:[%s1722_s0 + $0xa8] sm:$0xff]  ;;  %v536_v15 = vld [vmem:[%s1724_s2 + $0xf8] sm:$0xff]  ;;  %v533_v17 = vld [vmem:[%s1724_s2 + $0xe0] sm:$0xff] }
  0x21   :  { %252 = vmatprep.mubr.f32.mxu0 %v1246_v7  ;;  %v534_v14 = vld [vmem:[%s1724_s2 + $0xe8] sm:$0xff]  ;;  %v535_v18 = vld [vmem:[%s1724_s2 + $0xf0] sm:$0xff]  ;;  %v38_v21 = vld [vmem:[%s1722_s0 + $0xb8] sm:$0xff] }
  0x22   :  { %1129 = vmatpush1.bf16.msra.mxu0 %v1128_v57  ;;  %v1134_v16 = vpack.c.bf16 %v536_v15, %v534_v14  ;;  %v1136_v19 = vpack.c.bf16 %v535_v18, %v533_v17  ;;  %v37_v20 = vld [vmem:[%s1722_s0 + $0xb0] sm:$0xff]  ;;  %v39_v22 = vld [vmem:[%s1722_s0 + $0xc0] sm:$0xff]  ;;  %v40_v23 = vld [vmem:[%s1722_s0 + $0xc8] sm:$0xff] }
  0x23   :  { %1131 = vmatprep.subr.bf16.mxu0 %v1130_v58  ;;  %1151 = vmatpush1.bf16.msra.mxu1 %v1128_v57  ;;  %v41_v24 = vld [vmem:[%s1722_s0 + $0xd0] sm:$0xff]  ;;  %v42_v25 = vld [vmem:[%s1722_s0 + $0xd8] sm:$0xff]  ;;  %v43_v26 = vld [vmem:[%s1722_s0 + $0xe0] sm:$0xff] }
  0x24   :  { %1072 = vmatmul.mubr.msk.f32.gmra.mrb[12].mxu0 %vm55_vm0, %v21_v56  ;;  %1144 = vmatprep.subr.bf16.mxu1 %v1130_v58  ;;  %v44_v27 = vld [vmem:[%s1722_s0 + $0xe8] sm:$0xff]  ;;  %v45_v28 = vld [vmem:[%s1722_s0 + $0xf0] sm:$0xff]  ;;  %v46_v29 = vld [vmem:[%s1722_s0 + $0xf8] sm:$0xff]  ;;  %s1247_s0 = smov [#allocation2]  }
  0x25   :  { %258 = vmatprep.mubr.f32.mxu0 %v1246_v7  ;;  %s1055_s15 = sshll.u32 %s1247_s0, 4  ;;  %s1056_s15 = int_to_ptr.vmem [resolvable:$true] %s1055_s15 }
  0x26   :  { %1133 = vmatpush1.bf16.msra.mxu0 %v1132_v62  ;;  %s1222_s16 = scalar_lea.vmem %s1056_s15, 4096  ;;  %p1227_p1 = scmp.lt.s32.totalorder %s1056_s15, %s1056_s15 }
  0x27   :  { %1152 = vmatpush1.bf16.msra.mxu1 %v1132_v62  ;;  %1135 = vmatprep.subr.bf16.mxu0 %v1134_v16  ;;  %p1223_p0 = scmp.ne.s32.totalorder %s1056_s15, %s1222_s16  ;;  %p1228_p2 = scmp.lt.s32.totalorder %s1222_s16, %s1222_s16 }
  0x28   :  { %1073 = vmatmul.mubr.msk.f32.gmra.mrb[14].mxu0 %vm55_vm0, %v22_v61  ;;  %1145 = vmatprep.subr.bf16.mxu1 %v1134_v16 }
  0x29   :  { %264 = vmatprep.mubr.f32.mxu0 %v1246_v7  ;;  %p1229_p3 = por %p1228_p2, %p1227_p1 }
  0x2a   :  { %1137 = vmatpush1.bf16.msra.mxu0 %v1136_v19 }
  0x2b   :  { %1153 = vmatpush1.bf16.msra.mxu1 %v1136_v19  ;;  %p1230_p4 = pnand %p1229_p3, %p1223_p0 }
  0x2c   :  { %1074 = vmatmul.mubr.msk.f32.gmra.mrb[16].mxu0 %vm55_vm0, %v23_v63 }
  0x2d   :  { %270 = vmatprep.mubr.f32.mxu0 %v1246_v7 }
  0x30   :  { %1075 = vmatmul.mubr.msk.f32.gmra.mrb[18].mxu0 %vm55_vm0, %v24_v0 }
  0x31   :  { %276 = vmatprep.mubr.f32.mxu0 %v1246_v7 }
  0x34   :  { %1076 = vmatmul.mubr.msk.f32.gmra.mrb[20].mxu0 %vm55_vm0, %v25_v1 }
  0x35   :  { %282 = vmatprep.mubr.f32.mxu0 %v1246_v7 }
  0x38   :  { %1077 = vmatmul.mubr.msk.f32.gmra.mrb[22].mxu0 %vm55_vm0, %v26_v2 }
  0x39   :  { %288 = vmatprep.mubr.f32.mxu0 %v1246_v7 }
  0x3c   :  { %1078 = vmatmul.mubr.msk.f32.gmra.mrb[24].mxu0 %vm55_vm0, %v27_v3 }
  0x3d   :  { %294 = vmatprep.mubr.f32.mxu0 %v1246_v7 }
  0x40   :  { %1079 = vmatmul.mubr.msk.f32.gmra.mrb[26].mxu0 %vm55_vm0, %v28_v4 }
  0x41   :  { %300 = vmatprep.mubr.f32.mxu0 %v1246_v7 }
  0x44   :  { %1080 = vmatmul.mubr.msk.f32.gmra.mrb[28].mxu0 %vm55_vm0, %v29_v5 }
  0x45   :  { %306 = vmatprep.mubr.f32.mxu0 %v1246_v7 }
  0x48   :  { %1081 = vmatmul.mubr.msk.f32.gmra.mrb[30].mxu0 %vm55_vm0, %v30_v6 }
  0x49   :  { %312 = vmatprep.mubr.f32.mxu0 %v1246_v7 }
  0x4c   :  { %1082 = vmatmul.mubr.msk.f32.gmra.mrb[32].mxu0 %vm55_vm0, %v31_v8 }
  0x4d   :  { %318 = vmatprep.mubr.f32.mxu0 %v1246_v7 }
  0x50   :  { %1083 = vmatmul.mubr.msk.f32.gmra.mrb[34].mxu0 %vm55_vm0, %v32_v9 }
  0x51   :  { %324 = vmatprep.mubr.f32.mxu0 %v1246_v7 }
  0x54   :  { %1084 = vmatmul.mubr.msk.f32.gmra.mrb[36].mxu0 %vm55_vm0, %v33_v10 }
  0x55   :  { %330 = vmatprep.mubr.f32.mxu0 %v1246_v7 }
  0x58   :  { %1085 = vmatmul.mubr.msk.f32.gmra.mrb[38].mxu0 %vm55_vm0, %v34_v11 }
  0x59   :  { %336 = vmatprep.mubr.f32.mxu0 %v1246_v7 }
  0x5c   :  { %1086 = vmatmul.mubr.msk.f32.gmra.mrb[40].mxu0 %vm55_vm0, %v35_v12 }
  0x5d   :  { %342 = vmatprep.mubr.f32.mxu0 %v1246_v7 }
  0x60   :  { %1087 = vmatmul.mubr.msk.f32.gmra.mrb[42].mxu0 %vm55_vm0, %v36_v13 }
  0x61   :  { %348 = vmatprep.mubr.f32.mxu0 %v1246_v7 }
  0x64   :  { %1088 = vmatmul.mubr.msk.f32.gmra.mrb[44].mxu0 %vm55_vm0, %v37_v20 }
  0x65   :  { %354 = vmatprep.mubr.f32.mxu0 %v1246_v7 }
  0x68   :  { %1089 = vmatmul.mubr.msk.f32.gmra.mrb[46].mxu0 %vm55_vm0, %v38_v21 }
  0x69   :  { %360 = vmatprep.mubr.f32.mxu0 %v1246_v7 }
  0x6c   :  { %1090 = vmatmul.mubr.msk.f32.gmra.mrb[48].mxu0 %vm55_vm0, %v39_v22 }
  0x6d   :  { %366 = vmatprep.mubr.f32.mxu0 %v1246_v7 }
  0x70   :  { %1091 = vmatmul.mubr.msk.f32.gmra.mrb[50].mxu0 %vm55_vm0, %v40_v23 }
  0x71   :  { %372 = vmatprep.mubr.f32.mxu0 %v1246_v7 }
  0x74   :  { %1092 = vmatmul.mubr.msk.f32.gmra.mrb[52].mxu0 %vm55_vm0, %v41_v24 }
  0x75   :  { %378 = vmatprep.mubr.f32.mxu0 %v1246_v7 }
  0x78   :  { %1093 = vmatmul.mubr.msk.f32.gmra.mrb[54].mxu0 %vm55_vm0, %v42_v25 }
  0x79   :  { %384 = vmatprep.mubr.f32.mxu0 %v1246_v7 }
  0x7c   :  { %1094 = vmatmul.mubr.msk.f32.gmra.mrb[56].mxu0 %vm55_vm0, %v43_v26 }
  0x7d   :  { %390 = vmatprep.mubr.f32.mxu0 %v1246_v7 }
  0x80   :  { %1095 = vmatmul.mubr.msk.f32.gmra.mrb[58].mxu0 %vm55_vm0, %v44_v27 }
  0x81   :  { %396 = vmatprep.mubr.f32.mxu0 %v1246_v7 }
  0x84   :  { %1096 = vmatmul.mubr.msk.f32.gmra.mrb[60].mxu0 %vm55_vm0, %v45_v28 }
  0x85   :  { %402 = vmatprep.mubr.f32.mxu0 %v1246_v7 }
  0x88   :  { %1097 = vmatmul.mubr.msk.f32.gmra.mrb[62].mxu0 %vm55_vm0, %v46_v29 }
  0x89   :  { %601 = vmatprep.mubr.f32.mxu0 %v1246_v7 }
  0xdf   :  { %v218_v30 = vpop.f32.mrb[0].mxu0 }
  0xe0   :  { %v409_v31 = vmul.f32 %v218_v30, %v218_v30  ;;  %v220_v32 = vpop.f32.mrb[1].mxu0 }
  0xe1   :  { %v441_v33 = vmul.f32 %v220_v32, %v220_v32 }
  0xe3   :  { %v473_v34 = vadd.f32 %v441_v33, %v409_v31  ;;  %v224_v35 = vpop.f32.mrb[2].mxu0 }
  0xe4   :  { %v410_v36 = vmul.f32 %v224_v35, %v224_v35  ;;  %v226_v37 = vpop.f32.mrb[3].mxu0 }
  0xe5   :  { %v442_v38 = vmul.f32 %v226_v37, %v226_v37  ;;  %602 = vmatmul.mubr.f32.vlgmr.msra.gmra.mrb[64].mxu0 %v473_v34 }
  0xe6   :  { %607 = vmatprep.mubr.f32.mxu0 %v1246_v7 }
  0xe7   :  { %v474_v39 = vadd.f32 %v442_v38, %v410_v36  ;;  %v230_v40 = vpop.f32.mrb[4].mxu0 }
  0xe8   :  { %v411_v41 = vmul.f32 %v230_v40, %v230_v40  ;;  %v232_v42 = vpop.f32.mrb[5].mxu0 }
  0xe9   :  { %v443_v43 = vmul.f32 %v232_v42, %v232_v42  ;;  %608 = vmatmul.mubr.f32.gmra.mrb[66].mxu0 %v474_v39 }
  0xea   :  { %613 = vmatprep.mubr.f32.mxu0 %v1246_v7 }
  0xeb   :  { %v475_v44 = vadd.f32 %v443_v43, %v411_v41  ;;  %v236_v45 = vpop.f32.mrb[6].mxu0 }
  0xec   :  { %v412_v46 = vmul.f32 %v236_v45, %v236_v45  ;;  %v238_v47 = vpop.f32.mrb[7].mxu0 }
  0xed   :  { %v444_v48 = vmul.f32 %v238_v47, %v238_v47  ;;  %614 = vmatmul.mubr.f32.gmra.mrb[68].mxu0 %v475_v44 }
  0xef   :  { %v476_v49 = vadd.f32 %v444_v48, %v412_v46  ;;  %v242_v50 = vpop.f32.mrb[8].mxu0 }
  0xf0   :  { %v413_v51 = vmul.f32 %v242_v50, %v242_v50  ;;  %v244_v52 = vpop.f32.mrb[9].mxu0 }
  0xf1   :  { %v445_v53 = vmul.f32 %v244_v52, %v244_v52  ;;  %620 = vmatmul.mubr.f32.vlgmr.msra.gmra.mrb[0].mxu1 %v476_v49 }
  0xf2   :  { %625 = vmatprep.mubr.f32.mxu1 %v1246_v7 }
  0xf3   :  { %v477_v54 = vadd.f32 %v445_v53, %v413_v51  ;;  %v248_v55 = vpop.f32.mrb[10].mxu0 }
  0xf4   :  { %v414_v56 = vmul.f32 %v248_v55, %v248_v55  ;;  %v250_v57 = vpop.f32.mrb[11].mxu0 }
  0xf5   :  { %v446_v58 = vmul.f32 %v250_v57, %v250_v57  ;;  %626 = vmatmul.mubr.f32.gmra.mrb[2].mxu1 %v477_v54 }
  0xf6   :  { %631 = vmatprep.mubr.f32.mxu1 %v1246_v7 }
  0xf7   :  { %v478_v59 = vadd.f32 %v446_v58, %v414_v56  ;;  %v254_v60 = vpop.f32.mrb[12].mxu0 }
  0xf8   :  { %v415_v61 = vmul.f32 %v254_v60, %v254_v60  ;;  %v256_v62 = vpop.f32.mrb[13].mxu0 }
  0xf9   :  { %v447_v63 = vmul.f32 %v256_v62, %v256_v62  ;;  %632 = vmatmul.mubr.f32.gmra.mrb[4].mxu1 %v478_v59 }
  0xfa   :  { %637 = vmatprep.mubr.f32.mxu1 %v1246_v7 }
  0xfb   :  { %v479_v0 = vadd.f32 %v447_v63, %v415_v61  ;;  %v260_v1 = vpop.f32.mrb[14].mxu0 }
  0xfc   :  { %v416_v2 = vmul.f32 %v260_v1, %v260_v1  ;;  %v262_v3 = vpop.f32.mrb[15].mxu0 }
  0xfd   :  { %v448_v4 = vmul.f32 %v262_v3, %v262_v3  ;;  %638 = vmatmul.mubr.f32.gmra.mrb[6].mxu1 %v479_v0 }
  0xfe   :  { %643 = vmatprep.mubr.f32.mxu1 %v1246_v7 }
  0xff   :  { %v480_v5 = vadd.f32 %v448_v4, %v416_v2  ;;  %v266_v6 = vpop.f32.mrb[16].mxu0 }
 0x100   :  { %v417_v8 = vmul.f32 %v266_v6, %v266_v6  ;;  %v268_v9 = vpop.f32.mrb[17].mxu0 }
 0x101   :  { %v449_v10 = vmul.f32 %v268_v9, %v268_v9  ;;  %644 = vmatmul.mubr.f32.gmra.mrb[8].mxu1 %v480_v5 }
 0x102   :  { %649 = vmatprep.mubr.f32.mxu1 %v1246_v7 }
 0x103   :  { %v481_v11 = vadd.f32 %v449_v10, %v417_v8  ;;  %v272_v12 = vpop.f32.mrb[18].mxu0 }
 0x104   :  { %v418_v13 = vmul.f32 %v272_v12, %v272_v12  ;;  %v274_v14 = vpop.f32.mrb[19].mxu0 }
 0x105   :  { %v450_v15 = vmul.f32 %v274_v14, %v274_v14  ;;  %650 = vmatmul.mubr.f32.gmra.mrb[10].mxu1 %v481_v11 }
 0x106   :  { %655 = vmatprep.mubr.f32.mxu1 %v1246_v7 }
 0x107   :  { %v482_v16 = vadd.f32 %v450_v15, %v418_v13  ;;  %v278_v17 = vpop.f32.mrb[20].mxu0 }
 0x108   :  { %v419_v18 = vmul.f32 %v278_v17, %v278_v17  ;;  %v280_v19 = vpop.f32.mrb[21].mxu0 }
 0x109   :  { %v451_v20 = vmul.f32 %v280_v19, %v280_v19  ;;  %656 = vmatmul.mubr.f32.gmra.mrb[12].mxu1 %v482_v16 }
 0x10a   :  { %661 = vmatprep.mubr.f32.mxu1 %v1246_v7 }
 0x10b   :  { %v483_v21 = vadd.f32 %v451_v20, %v419_v18  ;;  %v284_v22 = vpop.f32.mrb[22].mxu0 }
 0x10c   :  { %v420_v23 = vmul.f32 %v284_v22, %v284_v22  ;;  %v286_v24 = vpop.f32.mrb[23].mxu0 }
 0x10d   :  { %v452_v25 = vmul.f32 %v286_v24, %v286_v24  ;;  %662 = vmatmul.mubr.f32.gmra.mrb[14].mxu1 %v483_v21 }
 0x10e   :  { %667 = vmatprep.mubr.f32.mxu1 %v1246_v7 }
 0x10f   :  { %v484_v26 = vadd.f32 %v452_v25, %v420_v23  ;;  %v290_v27 = vpop.f32.mrb[24].mxu0 }
 0x110   :  { %v421_v28 = vmul.f32 %v290_v27, %v290_v27  ;;  %v292_v29 = vpop.f32.mrb[25].mxu0 }
 0x111   :  { %v453_v30 = vmul.f32 %v292_v29, %v292_v29  ;;  %668 = vmatmul.mubr.f32.gmra.mrb[16].mxu1 %v484_v26 }
 0x112   :  { %673 = vmatprep.mubr.f32.mxu1 %v1246_v7 }
 0x113   :  { %v485_v31 = vadd.f32 %v453_v30, %v421_v28  ;;  %v296_v32 = vpop.f32.mrb[26].mxu0 }
 0x114   :  { %v422_v33 = vmul.f32 %v296_v32, %v296_v32  ;;  %v298_v34 = vpop.f32.mrb[27].mxu0 }
 0x115   :  { %v454_v35 = vmul.f32 %v298_v34, %v298_v34  ;;  %674 = vmatmul.mubr.f32.gmra.mrb[18].mxu1 %v485_v31 }
 0x116   :  { %679 = vmatprep.mubr.f32.mxu1 %v1246_v7 }
 0x117   :  { %v486_v36 = vadd.f32 %v454_v35, %v422_v33  ;;  %v302_v37 = vpop.f32.mrb[28].mxu0 }
 0x118   :  { %v423_v38 = vmul.f32 %v302_v37, %v302_v37  ;;  %v304_v39 = vpop.f32.mrb[29].mxu0 }
 0x119   :  { %v455_v40 = vmul.f32 %v304_v39, %v304_v39  ;;  %680 = vmatmul.mubr.f32.gmra.mrb[20].mxu1 %v486_v36 }
 0x11a   :  { %685 = vmatprep.mubr.f32.mxu1 %v1246_v7 }
 0x11b   :  { %v487_v41 = vadd.f32 %v455_v40, %v423_v38  ;;  %v308_v42 = vpop.f32.mrb[30].mxu0 }
 0x11c   :  { %v424_v43 = vmul.f32 %v308_v42, %v308_v42  ;;  %v310_v44 = vpop.f32.mrb[31].mxu0 }
 0x11d   :  { %v456_v45 = vmul.f32 %v310_v44, %v310_v44  ;;  %686 = vmatmul.mubr.f32.gmra.mrb[22].mxu1 %v487_v41 }
 0x11e   :  { %691 = vmatprep.mubr.f32.mxu1 %v1246_v7 }
 0x11f   :  { %v488_v46 = vadd.f32 %v456_v45, %v424_v43  ;;  %v314_v47 = vpop.f32.mrb[32].mxu0 }
 0x120   :  { %v425_v48 = vmul.f32 %v314_v47, %v314_v47  ;;  %v316_v49 = vpop.f32.mrb[33].mxu0 }
 0x121   :  { %v457_v50 = vmul.f32 %v316_v49, %v316_v49  ;;  %692 = vmatmul.mubr.f32.gmra.mrb[24].mxu1 %v488_v46 }
 0x122   :  { %697 = vmatprep.mubr.f32.mxu1 %v1246_v7 }
 0x123   :  { %v489_v51 = vadd.f32 %v457_v50, %v425_v48  ;;  %v320_v52 = vpop.f32.mrb[34].mxu0 }
 0x124   :  { %v426_v53 = vmul.f32 %v320_v52, %v320_v52  ;;  %v322_v54 = vpop.f32.mrb[35].mxu0 }
 0x125   :  { %v458_v55 = vmul.f32 %v322_v54, %v322_v54  ;;  %698 = vmatmul.mubr.f32.gmra.mrb[26].mxu1 %v489_v51 }
 0x126   :  { %703 = vmatprep.mubr.f32.mxu1 %v1246_v7 }
 0x127   :  { %v490_v56 = vadd.f32 %v458_v55, %v426_v53  ;;  %v326_v57 = vpop.f32.mrb[36].mxu0 }
 0x128   :  { %v427_v58 = vmul.f32 %v326_v57, %v326_v57  ;;  %v328_v59 = vpop.f32.mrb[37].mxu0 }
 0x129   :  { %v459_v60 = vmul.f32 %v328_v59, %v328_v59  ;;  %704 = vmatmul.mubr.f32.gmra.mrb[28].mxu1 %v490_v56 }
 0x12a   :  { %709 = vmatprep.mubr.f32.mxu1 %v1246_v7 }
 0x12b   :  { %v491_v61 = vadd.f32 %v459_v60, %v427_v58  ;;  %v332_v62 = vpop.f32.mrb[38].mxu0 }
 0x12c   :  { %v428_v63 = vmul.f32 %v332_v62, %v332_v62  ;;  %v334_v0 = vpop.f32.mrb[39].mxu0 }
 0x12d   :  { %v460_v1 = vmul.f32 %v334_v0, %v334_v0  ;;  %710 = vmatmul.mubr.f32.gmra.mrb[30].mxu1 %v491_v61 }
 0x12e   :  { %715 = vmatprep.mubr.f32.mxu1 %v1246_v7 }
 0x12f   :  { %v492_v2 = vadd.f32 %v460_v1, %v428_v63  ;;  %v338_v3 = vpop.f32.mrb[40].mxu0 }
 0x130   :  { %v429_v4 = vmul.f32 %v338_v3, %v338_v3  ;;  %v340_v5 = vpop.f32.mrb[41].mxu0 }
 0x131   :  { %v461_v6 = vmul.f32 %v340_v5, %v340_v5  ;;  %716 = vmatmul.mubr.f32.gmra.mrb[32].mxu1 %v492_v2 }
 0x132   :  { %721 = vmatprep.mubr.f32.mxu1 %v1246_v7 }
 0x133   :  { %v493_v8 = vadd.f32 %v461_v6, %v429_v4  ;;  %v344_v9 = vpop.f32.mrb[42].mxu0 }
 0x134   :  { %v430_v10 = vmul.f32 %v344_v9, %v344_v9  ;;  %v346_v11 = vpop.f32.mrb[43].mxu0 }
 0x135   :  { %v462_v12 = vmul.f32 %v346_v11, %v346_v11  ;;  %722 = vmatmul.mubr.f32.gmra.mrb[34].mxu1 %v493_v8 }
 0x136   :  { %727 = vmatprep.mubr.f32.mxu1 %v1246_v7 }
 0x137   :  { %v494_v13 = vadd.f32 %v462_v12, %v430_v10  ;;  %v350_v14 = vpop.f32.mrb[44].mxu0 }
 0x138   :  { %v431_v15 = vmul.f32 %v350_v14, %v350_v14  ;;  %v352_v16 = vpop.f32.mrb[45].mxu0 }
 0x139   :  { %v463_v17 = vmul.f32 %v352_v16, %v352_v16  ;;  %728 = vmatmul.mubr.f32.gmra.mrb[36].mxu1 %v494_v13 }
 0x13a   :  { %733 = vmatprep.mubr.f32.mxu1 %v1246_v7 }
 0x13b   :  { %v495_v18 = vadd.f32 %v463_v17, %v431_v15  ;;  %v356_v19 = vpop.f32.mrb[46].mxu0 }
 0x13c   :  { %v432_v20 = vmul.f32 %v356_v19, %v356_v19  ;;  %v358_v21 = vpop.f32.mrb[47].mxu0 }
 0x13d   :  { %v464_v22 = vmul.f32 %v358_v21, %v358_v21  ;;  %734 = vmatmul.mubr.f32.gmra.mrb[38].mxu1 %v495_v18 }
 0x13e   :  { %739 = vmatprep.mubr.f32.mxu1 %v1246_v7 }
 0x13f   :  { %v496_v23 = vadd.f32 %v464_v22, %v432_v20  ;;  %v362_v24 = vpop.f32.mrb[48].mxu0 }
 0x140   :  { %v433_v25 = vmul.f32 %v362_v24, %v362_v24  ;;  %v364_v26 = vpop.f32.mrb[49].mxu0 }
 0x141   :  { %v465_v27 = vmul.f32 %v364_v26, %v364_v26  ;;  %740 = vmatmul.mubr.f32.gmra.mrb[40].mxu1 %v496_v23 }
 0x142   :  { %745 = vmatprep.mubr.f32.mxu1 %v1246_v7 }
 0x143   :  { %v497_v28 = vadd.f32 %v465_v27, %v433_v25  ;;  %v368_v29 = vpop.f32.mrb[50].mxu0 }
 0x144   :  { %v434_v30 = vmul.f32 %v368_v29, %v368_v29  ;;  %v370_v31 = vpop.f32.mrb[51].mxu0 }
 0x145   :  { %v466_v32 = vmul.f32 %v370_v31, %v370_v31  ;;  %746 = vmatmul.mubr.f32.gmra.mrb[42].mxu1 %v497_v28 }
 0x146   :  { %751 = vmatprep.mubr.f32.mxu1 %v1246_v7 }
 0x147   :  { %v498_v33 = vadd.f32 %v466_v32, %v434_v30  ;;  %v374_v34 = vpop.f32.mrb[52].mxu0 }
 0x148   :  { %v435_v35 = vmul.f32 %v374_v34, %v374_v34  ;;  %v376_v36 = vpop.f32.mrb[53].mxu0 }
 0x149   :  { %v467_v37 = vmul.f32 %v376_v36, %v376_v36  ;;  %752 = vmatmul.mubr.f32.gmra.mrb[44].mxu1 %v498_v33 }
 0x14a   :  { %757 = vmatprep.mubr.f32.mxu1 %v1246_v7 }
 0x14b   :  { %v499_v38 = vadd.f32 %v467_v37, %v435_v35  ;;  %v380_v39 = vpop.f32.mrb[54].mxu0 }
 0x14c   :  { %v436_v40 = vmul.f32 %v380_v39, %v380_v39  ;;  %v382_v41 = vpop.f32.mrb[55].mxu0 }
 0x14d   :  { %v468_v42 = vmul.f32 %v382_v41, %v382_v41  ;;  %758 = vmatmul.mubr.f32.gmra.mrb[46].mxu1 %v499_v38 }
 0x14e   :  { %763 = vmatprep.mubr.f32.mxu1 %v1246_v7 }
 0x14f   :  { %v500_v43 = vadd.f32 %v468_v42, %v436_v40  ;;  %v386_v44 = vpop.f32.mrb[56].mxu0 }
 0x150   :  { %v437_v45 = vmul.f32 %v386_v44, %v386_v44  ;;  %v388_v46 = vpop.f32.mrb[57].mxu0 }
 0x151   :  { %v469_v47 = vmul.f32 %v388_v46, %v388_v46  ;;  %764 = vmatmul.mubr.f32.gmra.mrb[48].mxu1 %v500_v43 }
 0x152   :  { %769 = vmatprep.mubr.f32.mxu1 %v1246_v7 }
 0x153   :  { %v501_v48 = vadd.f32 %v469_v47, %v437_v45  ;;  %v392_v49 = vpop.f32.mrb[58].mxu0 }
 0x154   :  { %v438_v50 = vmul.f32 %v392_v49, %v392_v49  ;;  %v394_v51 = vpop.f32.mrb[59].mxu0 }
 0x155   :  { %v470_v52 = vmul.f32 %v394_v51, %v394_v51  ;;  %770 = vmatmul.mubr.f32.gmra.mrb[50].mxu1 %v501_v48 }
 0x156   :  { %775 = vmatprep.mubr.f32.mxu1 %v1246_v7 }
 0x157   :  { %v502_v53 = vadd.f32 %v470_v52, %v438_v50  ;;  %v398_v54 = vpop.f32.mrb[60].mxu0 }
 0x158   :  { %v439_v55 = vmul.f32 %v398_v54, %v398_v54  ;;  %v400_v56 = vpop.f32.mrb[61].mxu0 }
 0x159   :  { %v471_v57 = vmul.f32 %v400_v56, %v400_v56  ;;  %776 = vmatmul.mubr.f32.gmra.mrb[52].mxu1 %v502_v53 }
 0x15a   :  { %781 = vmatprep.mubr.f32.mxu1 %v1246_v7 }
 0x15b   :  { %v503_v58 = vadd.f32 %v471_v57, %v439_v55  ;;  %v404_v59 = vpop.f32.mrb[62].mxu0 }
 0x15c   :  { %v440_v60 = vmul.f32 %v404_v59, %v404_v59  ;;  %v406_v61 = vpop.f32.mrb[63].mxu0 }
 0x15d   :  { %v472_v62 = vmul.f32 %v406_v61, %v406_v61  ;;  %782 = vmatmul.mubr.f32.gmra.mrb[54].mxu1 %v503_v58 }
 0x15e   :  { %787 = vmatprep.mubr.f32.mxu1 %v1246_v7 }
 0x15f   :  { %v504_v63 = vadd.f32 %v472_v62, %v440_v60 }
 0x161   :  { %788 = vmatmul.mubr.f32.gmra.mrb[56].mxu1 %v504_v63 }
 0x1b8   :  { %v603_v0 = vpop.f32.mrb[64].mxu0 }
 0x1b9   :  { %v794_v1 = vmul.f32 %v603_v0, %v603_v0  ;;  %v605_v2 = vpop.f32.mrb[65].mxu0 }
 0x1ba   :  { %v826_v3 = vmul.f32 %v605_v2, %v605_v2 }
 0x1bc   :  { %v609_v4 = vpop.f32.mrb[66].mxu0  ;;  %v1582_v5 = vadd.f32 %v826_v3, %v794_v1 }
 0x1bd   :  { %v795_v6 = vmul.f32 %v609_v4, %v609_v4  ;;  %v611_v8 = vpop.f32.mrb[67].mxu0 }
 0x1be   :  { %v827_v9 = vmul.f32 %v611_v8, %v611_v8  ;;  %890 = vadd.xlane.f32.xlu0 %v1582_v5 }
 0x1c0   :  { %v615_v10 = vpop.f32.mrb[68].mxu0  ;;  %v1585_v11 = vadd.f32 %v827_v9, %v795_v6 }
 0x1c1   :  { %v796_v12 = vmul.f32 %v615_v10, %v615_v10  ;;  %v617_v13 = vpop.f32.mrb[69].mxu0 }
 0x1c2   :  { %v828_v7 = vmul.f32 %v617_v13, %v617_v13  ;;  %892 = vadd.xlane.f32.xlu0 %v1585_v11 }
 0x1c4   :  { %v621_v14 = vpop.f32.mrb[0].mxu1  ;;  %v1588_v15 = vadd.f32 %v828_v7, %v796_v12 }
 0x1c5   :  { %v797_v16 = vmul.f32 %v621_v14, %v621_v14  ;;  %v623_v17 = vpop.f32.mrb[1].mxu1 }
 0x1c6   :  { %v829_v18 = vmul.f32 %v623_v17, %v623_v17  ;;  %894 = vadd.xlane.f32.xlu1 %v1588_v15 }
 0x1c8   :  { %v627_v19 = vpop.f32.mrb[2].mxu1  ;;  %v1591_v20 = vadd.f32 %v829_v18, %v797_v16 }
 0x1c9   :  { %v798_v21 = vmul.f32 %v627_v19, %v627_v19  ;;  %v629_v22 = vpop.f32.mrb[3].mxu1 }
 0x1ca   :  { %v830_v23 = vmul.f32 %v629_v22, %v629_v22  ;;  %896 = vadd.xlane.f32.xlu1 %v1591_v20 }
 0x1cc   :  { %v633_v24 = vpop.f32.mrb[4].mxu1  ;;  %v1594_v25 = vadd.f32 %v830_v23, %v798_v21 }
 0x1cd   :  { %v799_v26 = vmul.f32 %v633_v24, %v633_v24  ;;  %v635_v27 = vpop.f32.mrb[5].mxu1 }
 0x1ce   :  { %v831_v28 = vmul.f32 %v635_v27, %v635_v27  ;;  %898 = vadd.xlane.f32.xlu0 %v1594_v25 }
 0x1d0   :  { %v639_v29 = vpop.f32.mrb[6].mxu1  ;;  %v1597_v30 = vadd.f32 %v831_v28, %v799_v26 }
 0x1d1   :  { %v800_v31 = vmul.f32 %v639_v29, %v639_v29  ;;  %v641_v32 = vpop.f32.mrb[7].mxu1 }
 0x1d2   :  { %v832_v33 = vmul.f32 %v641_v32, %v641_v32  ;;  %900 = vadd.xlane.f32.xlu1 %v1597_v30 }
 0x1d4   :  { %v645_v34 = vpop.f32.mrb[8].mxu1  ;;  %v1600_v35 = vadd.f32 %v832_v33, %v800_v31 }
 0x1d5   :  { %v801_v36 = vmul.f32 %v645_v34, %v645_v34  ;;  %v647_v37 = vpop.f32.mrb[9].mxu1 }
 0x1d6   :  { %v833_v38 = vmul.f32 %v647_v37, %v647_v37  ;;  %902 = vadd.xlane.f32.xlu0 %v1600_v35 }
 0x1d8   :  { %v651_v39 = vpop.f32.mrb[10].mxu1  ;;  %v1603_v40 = vadd.f32 %v833_v38, %v801_v36 }
 0x1d9   :  { %v802_v41 = vmul.f32 %v651_v39, %v651_v39  ;;  %v653_v42 = vpop.f32.mrb[11].mxu1 }
 0x1da   :  { %v834_v43 = vmul.f32 %v653_v42, %v653_v42  ;;  %904 = vadd.xlane.f32.xlu1 %v1603_v40 }
 0x1dc   :  { %v657_v44 = vpop.f32.mrb[12].mxu1  ;;  %v1606_v45 = vadd.f32 %v834_v43, %v802_v41 }
 0x1dd   :  { %v803_v46 = vmul.f32 %v657_v44, %v657_v44  ;;  %v659_v47 = vpop.f32.mrb[13].mxu1 }
 0x1de   :  { %v835_v48 = vmul.f32 %v659_v47, %v659_v47  ;;  %906 = vadd.xlane.f32.xlu0 %v1606_v45 }
 0x1e0   :  { %v663_v49 = vpop.f32.mrb[14].mxu1  ;;  %v1609_v50 = vadd.f32 %v835_v48, %v803_v46 }
 0x1e1   :  { %v804_v51 = vmul.f32 %v663_v49, %v663_v49  ;;  %v665_v52 = vpop.f32.mrb[15].mxu1 }
 0x1e2   :  { %v836_v53 = vmul.f32 %v665_v52, %v665_v52  ;;  %908 = vadd.xlane.f32.xlu1 %v1609_v50 }
 0x1e4   :  { %v669_v54 = vpop.f32.mrb[16].mxu1  ;;  %v1612_v55 = vadd.f32 %v836_v53, %v804_v51 }
 0x1e5   :  { %v805_v56 = vmul.f32 %v669_v54, %v669_v54  ;;  %v671_v57 = vpop.f32.mrb[17].mxu1 }
 0x1e6   :  { %v837_v58 = vmul.f32 %v671_v57, %v671_v57  ;;  %910 = vadd.xlane.f32.xlu0 %v1612_v55 }
 0x1e8   :  { %v675_v59 = vpop.f32.mrb[18].mxu1  ;;  %v1615_v60 = vadd.f32 %v837_v58, %v805_v56 }
 0x1e9   :  { %v806_v61 = vmul.f32 %v675_v59, %v675_v59  ;;  %v677_v62 = vpop.f32.mrb[19].mxu1 }
 0x1ea   :  { %v838_v63 = vmul.f32 %v677_v62, %v677_v62  ;;  %912 = vadd.xlane.f32.xlu1 %v1615_v60 }
 0x1ec   :  { %v681_v0 = vpop.f32.mrb[20].mxu1  ;;  %v1618_v1 = vadd.f32 %v838_v63, %v806_v61 }
 0x1ed   :  { %v807_v2 = vmul.f32 %v681_v0, %v681_v0  ;;  %v683_v3 = vpop.f32.mrb[21].mxu1 }
 0x1ee   :  { %v839_v4 = vmul.f32 %v683_v3, %v683_v3  ;;  %914 = vadd.xlane.f32.xlu0 %v1618_v1 }
 0x1f0   :  { %v687_v6 = vpop.f32.mrb[22].mxu1  ;;  %v1621_v8 = vadd.f32 %v839_v4, %v807_v2 }
 0x1f1   :  { %v808_v9 = vmul.f32 %v687_v6, %v687_v6  ;;  %v689_v10 = vpop.f32.mrb[23].mxu1 }
 0x1f2   :  { %v840_v12 = vmul.f32 %v689_v10, %v689_v10  ;;  %916 = vadd.xlane.f32.xlu1 %v1621_v8 }
 0x1f4   :  { %v693_v13 = vpop.f32.mrb[24].mxu1  ;;  %v1624_v7 = vadd.f32 %v840_v12, %v808_v9 }
 0x1f5   :  { %v809_v14 = vmul.f32 %v693_v13, %v693_v13  ;;  %v695_v16 = vpop.f32.mrb[25].mxu1 }
 0x1f6   :  { %v841_v17 = vmul.f32 %v695_v16, %v695_v16  ;;  %918 = vadd.xlane.f32.xlu0 %v1624_v7 }
 0x1f8   :  { %v699_v18 = vpop.f32.mrb[26].mxu1  ;;  %v1627_v19 = vadd.f32 %v841_v17, %v809_v14 }
 0x1f9   :  { %v810_v21 = vmul.f32 %v699_v18, %v699_v18  ;;  %v701_v22 = vpop.f32.mrb[27].mxu1 }
 0x1fa   :  { %v842_v23 = vmul.f32 %v701_v22, %v701_v22  ;;  %920 = vadd.xlane.f32.xlu1 %v1627_v19 }
 0x1fc   :  { %v705_v24 = vpop.f32.mrb[28].mxu1  ;;  %v1630_v26 = vadd.f32 %v842_v23, %v810_v21 }
 0x1fd   :  { %v811_v27 = vmul.f32 %v705_v24, %v705_v24  ;;  %v707_v28 = vpop.f32.mrb[29].mxu1 }
 0x1fe   :  { %v843_v29 = vmul.f32 %v707_v28, %v707_v28  ;;  %922 = vadd.xlane.f32.xlu0 %v1630_v26 }
 0x200   :  { %v711_v31 = vpop.f32.mrb[30].mxu1  ;;  %v1633_v32 = vadd.f32 %v843_v29, %v811_v27 }
 0x201   :  { %v812_v33 = vmul.f32 %v711_v31, %v711_v31  ;;  %v713_v34 = vpop.f32.mrb[31].mxu1 }
 0x202   :  { %v844_v36 = vmul.f32 %v713_v34, %v713_v34  ;;  %924 = vadd.xlane.f32.xlu1 %v1633_v32 }
 0x204   :  { %v717_v37 = vpop.f32.mrb[32].mxu1  ;;  %v1636_v38 = vadd.f32 %v844_v36, %v812_v33 }
 0x205   :  { %v813_v39 = vmul.f32 %v717_v37, %v717_v37  ;;  %v719_v41 = vpop.f32.mrb[33].mxu1 }
 0x206   :  { %v845_v42 = vmul.f32 %v719_v41, %v719_v41  ;;  %926 = vadd.xlane.f32.xlu0 %v1636_v38 }
 0x208   :  { %v723_v43 = vpop.f32.mrb[34].mxu1  ;;  %v1639_v44 = vadd.f32 %v845_v42, %v813_v39 }
 0x209   :  { %v814_v46 = vmul.f32 %v723_v43, %v723_v43  ;;  %v725_v47 = vpop.f32.mrb[35].mxu1 }
 0x20a   :  { %v846_v48 = vmul.f32 %v725_v47, %v725_v47  ;;  %928 = vadd.xlane.f32.xlu1 %v1639_v44 }
 0x20c   :  { %v729_v49 = vpop.f32.mrb[36].mxu1  ;;  %v1642_v51 = vadd.f32 %v846_v48, %v814_v46 }
 0x20d   :  { %v815_v52 = vmul.f32 %v729_v49, %v729_v49  ;;  %v731_v53 = vpop.f32.mrb[37].mxu1 }
 0x20e   :  { %v847_v54 = vmul.f32 %v731_v53, %v731_v53  ;;  %930 = vadd.xlane.f32.xlu0 %v1642_v51 }
 0x210   :  { %v735_v56 = vpop.f32.mrb[38].mxu1  ;;  %v1645_v57 = vadd.f32 %v847_v54, %v815_v52 }
 0x211   :  { %v816_v58 = vmul.f32 %v735_v56, %v735_v56  ;;  %v737_v59 = vpop.f32.mrb[39].mxu1 }
 0x212   :  { %v848_v61 = vmul.f32 %v737_v59, %v737_v59  ;;  %932 = vadd.xlane.f32.xlu1 %v1645_v57 }
 0x214   :  { %v741_v62 = vpop.f32.mrb[40].mxu1  ;;  %v1648_v63 = vadd.f32 %v848_v61, %v816_v58 }
 0x215   :  { %v817_v0 = vmul.f32 %v741_v62, %v741_v62  ;;  %v743_v2 = vpop.f32.mrb[41].mxu1 }
 0x216   :  { %v849_v3 = vmul.f32 %v743_v2, %v743_v2  ;;  %934 = vadd.xlane.f32.xlu0 %v1648_v63 }
 0x218   :  { %v747_v4 = vpop.f32.mrb[42].mxu1  ;;  %v1651_v6 = vadd.f32 %v849_v3, %v817_v0 }
 0x219   :  { %v818_v9 = vmul.f32 %v747_v4, %v747_v4  ;;  %v749_v10 = vpop.f32.mrb[43].mxu1 }
 0x21a   :  { %v850_v12 = vmul.f32 %v749_v10, %v749_v10  ;;  %936 = vadd.xlane.f32.xlu1 %v1651_v6 }
 0x21c   :  { %v753_v13 = vpop.f32.mrb[44].mxu1  ;;  %v1654_v14 = vadd.f32 %v850_v12, %v818_v9 }
 0x21d   :  { %v819_v16 = vmul.f32 %v753_v13, %v753_v13  ;;  %v755_v17 = vpop.f32.mrb[45].mxu1 }
 0x21e   :  { %v851_v18 = vmul.f32 %v755_v17, %v755_v17  ;;  %938 = vadd.xlane.f32.xlu0 %v1654_v14 }
 0x220   :  { %v759_v21 = vpop.f32.mrb[46].mxu1  ;;  %v1657_v22 = vadd.f32 %v851_v18, %v819_v16 }
 0x221   :  { %v820_v23 = vmul.f32 %v759_v21, %v759_v21  ;;  %v761_v24 = vpop.f32.mrb[47].mxu1 }
 0x222   :  { %v852_v27 = vmul.f32 %v761_v24, %v761_v24  ;;  %940 = vadd.xlane.f32.xlu1 %v1657_v22 }
 0x224   :  { %v765_v28 = vpop.f32.mrb[48].mxu1  ;;  %v1660_v29 = vadd.f32 %v852_v27, %v820_v23 }
 0x225   :  { %v821_v31 = vmul.f32 %v765_v28, %v765_v28  ;;  %v767_v33 = vpop.f32.mrb[49].mxu1 }
 0x226   :  { %v853_v34 = vmul.f32 %v767_v33, %v767_v33  ;;  %942 = vadd.xlane.f32.xlu0 %v1660_v29 }
 0x228   :  { %v771_v36 = vpop.f32.mrb[50].mxu1  ;;  %v1663_v37 = vadd.f32 %v853_v34, %v821_v31 }
 0x229   :  { %v822_v39 = vmul.f32 %v771_v36, %v771_v36  ;;  %v773_v41 = vpop.f32.mrb[51].mxu1 }
 0x22a   :  { %v854_v42 = vmul.f32 %v773_v41, %v773_v41  ;;  %944 = vadd.xlane.f32.xlu1 %v1663_v37 }
 0x22c   :  { %v777_v43 = vpop.f32.mrb[52].mxu1  ;;  %v1666_v46 = vadd.f32 %v854_v42, %v822_v39 }
 0x22d   :  { %v823_v47 = vmul.f32 %v777_v43, %v777_v43  ;;  %v779_v48 = vpop.f32.mrb[53].mxu1 }
 0x22e   :  { %v855_v49 = vmul.f32 %v779_v48, %v779_v48  ;;  %946 = vadd.xlane.f32.xlu0 %v1666_v46 }
 0x230   :  { %v783_v52 = vpop.f32.mrb[54].mxu1  ;;  %v1669_v53 = vadd.f32 %v855_v49, %v823_v47 }
 0x231   :  { %v824_v54 = vmul.f32 %v783_v52, %v783_v52  ;;  %v785_v56 = vpop.f32.mrb[55].mxu1 }
 0x232   :  { %v856_v58 = vmul.f32 %v785_v56, %v785_v56  ;;  %948 = vadd.xlane.f32.xlu1 %v1669_v53 }
 0x234   :  { %v789_v59 = vpop.f32.mrb[56].mxu1  ;;  %v1672_v61 = vadd.f32 %v856_v58, %v824_v54 }
 0x235   :  { %v825_v62 = vmul.f32 %v789_v59, %v789_v59  ;;  %v791_v0 = vpop.f32.mrb[57].mxu1 }
 0x236   :  { %v857_v2 = vmul.f32 %v791_v0, %v791_v0  ;;  %950 = vadd.xlane.f32.xlu0 %v1672_v61 }
 0x238   :  { %v1675_v3 = vadd.f32 %v857_v2, %v825_v62 }
 0x23a   :  { %952 = vadd.xlane.f32.xlu1 %v1675_v3 }
 0x24b   :  { %v891_v4 = vpop.xlane.xlu0 %890 }
 0x24c   :  { %1158 = vrcp.f32 %v891_v4 }
 0x24f   :  { %v893_v9 = vpop.xlane.xlu0 %892 }
 0x250   :  { %1160 = vrcp.f32 %v893_v9 }
 0x253   :  { %v895_v10 = vpop.xlane.xlu1 %894 }
 0x254   :  { %1162 = vrcp.f32 %v895_v10 }
 0x256   :  { %v1159_v12 = vpop.eup %1158 }
 0x257   :  { %v986_v13 = vmul.f32 %v1159_v12, %v1582_v5  ;;  %v897_v16 = vpop.xlane.xlu1 %896 }
 0x258   :  { %1164 = vrcp.f32 %v897_v16 }
 0x259   :  { %1018 = vst [vmem:[#allocation2] sm:$0xff] %v986_v13 }
 0x25a   :  { %v1161_v17 = vpop.eup %1160 }
 0x25b   :  { %v987_v18 = vmul.f32 %v1161_v17, %v1585_v11  ;;  %v899_v21 = vpop.xlane.xlu0 %898 }
 0x25c   :  { %1166 = vrcp.f32 %v899_v21 }
 0x25d   :  { %1019 = vst [vmem:[#allocation2 + $0x8] sm:$0xff] %v987_v18 }
 0x25e   :  { %v1163_v23 = vpop.eup %1162 }
 0x25f   :  { %v988_v24 = vmul.f32 %v1163_v23, %v1588_v15  ;;  %v901_v27 = vpop.xlane.xlu1 %900 }
 0x260   :  { %1168 = vrcp.f32 %v901_v27 }
 0x261   :  { %1020 = vst [vmem:[#allocation2 + $0x10] sm:$0xff] %v988_v24 }
 0x262   :  { %v1165_v28 = vpop.eup %1164 }
 0x263   :  { %v989_v31 = vmul.f32 %v1165_v28, %v1591_v20  ;;  %v903_v33 = vpop.xlane.xlu0 %902 }
 0x264   :  { %1170 = vrcp.f32 %v903_v33 }
 0x265   :  { %1021 = vst [vmem:[#allocation2 + $0x18] sm:$0xff] %v989_v31 }
 0x266   :  { %v1167_v5 = vpop.eup %1166 }
 0x267   :  { %v990_v34 = vmul.f32 %v1167_v5, %v1594_v25  ;;  %v905_v36 = vpop.xlane.xlu1 %904 }
 0x268   :  { %1172 = vrcp.f32 %v905_v36 }
 0x269   :  { %1022 = vst [vmem:[#allocation2 + $0x20] sm:$0xff] %v990_v34 }
 0x26a   :  { %v1169_v11 = vpop.eup %1168 }
 0x26b   :  { %v991_v39 = vmul.f32 %v1169_v11, %v1597_v30  ;;  %v907_v41 = vpop.xlane.xlu0 %906 }
 0x26c   :  { %1174 = vrcp.f32 %v907_v41 }
 0x26d   :  { %1023 = vst [vmem:[#allocation2 + $0x28] sm:$0xff] %v991_v39 }
 0x26e   :  { %v1171_v15 = vpop.eup %1170 }
 0x26f   :  { %v992_v42 = vmul.f32 %v1171_v15, %v1600_v35  ;;  %v909_v43 = vpop.xlane.xlu1 %908 }
 0x270   :  { %1176 = vrcp.f32 %v909_v43 }
 0x271   :  { %1024 = vst [vmem:[#allocation2 + $0x30] sm:$0xff] %v992_v42 }
 0x272   :  { %v1173_v20 = vpop.eup %1172 }
 0x273   :  { %v993_v47 = vmul.f32 %v1173_v20, %v1603_v40  ;;  %v911_v48 = vpop.xlane.xlu0 %910 }
 0x274   :  { %1178 = vrcp.f32 %v911_v48 }
 0x275   :  { %1025 = vst [vmem:[#allocation2 + $0x38] sm:$0xff] %v993_v47 }
 0x276   :  { %v1175_v25 = vpop.eup %1174 }
 0x277   :  { %v994_v49 = vmul.f32 %v1175_v25, %v1606_v45  ;;  %v913_v52 = vpop.xlane.xlu1 %912 }
 0x278   :  { %1180 = vrcp.f32 %v913_v52 }
 0x279   :  { %1026 = vst [vmem:[#allocation2 + $0x40] sm:$0xff] %v994_v49 }
 0x27a   :  { %v1177_v30 = vpop.eup %1176 }
 0x27b   :  { %v995_v54 = vmul.f32 %v1177_v30, %v1609_v50  ;;  %v915_v56 = vpop.xlane.xlu0 %914 }
 0x27c   :  { %1182 = vrcp.f32 %v915_v56 }
 0x27d   :  { %1027 = vst [vmem:[#allocation2 + $0x48] sm:$0xff] %v995_v54 }
 0x27e   :  { %v1179_v35 = vpop.eup %1178 }
 0x27f   :  { %v996_v58 = vmul.f32 %v1179_v35, %v1612_v55  ;;  %v917_v59 = vpop.xlane.xlu1 %916 }
 0x280   :  { %1184 = vrcp.f32 %v917_v59 }
 0x281   :  { %1028 = vst [vmem:[#allocation2 + $0x50] sm:$0xff] %v996_v58 }
 0x282   :  { %v1181_v40 = vpop.eup %1180 }
 0x283   :  { %v997_v62 = vmul.f32 %v1181_v40, %v1615_v60  ;;  %v919_v0 = vpop.xlane.xlu0 %918 }
 0x284   :  { %1186 = vrcp.f32 %v919_v0 }
 0x285   :  { %1029 = vst [vmem:[#allocation2 + $0x58] sm:$0xff] %v997_v62 }
 0x286   :  { %v1183_v45 = vpop.eup %1182 }
 0x287   :  { %v998_v2 = vmul.f32 %v1183_v45, %v1618_v1  ;;  %v921_v4 = vpop.xlane.xlu1 %920 }
 0x288   :  { %1188 = vrcp.f32 %v921_v4 }
 0x289   :  { %1030 = vst [vmem:[#allocation2 + $0x60] sm:$0xff] %v998_v2 }
 0x28a   :  { %v1185_v50 = vpop.eup %1184 }
 0x28b   :  { %v999_v9 = vmul.f32 %v1185_v50, %v1621_v8  ;;  %v923_v10 = vpop.xlane.xlu0 %922 }
 0x28c   :  { %1190 = vrcp.f32 %v923_v10 }
 0x28d   :  { %1031 = vst [vmem:[#allocation2 + $0x68] sm:$0xff] %v999_v9 }
 0x28e   :  { %v1187_v55 = vpop.eup %1186 }
 0x28f   :  { %v1000_v12 = vmul.f32 %v1187_v55, %v1624_v7  ;;  %v925_v13 = vpop.xlane.xlu1 %924 }
 0x290   :  { %1192 = vrcp.f32 %v925_v13 }
 0x291   :  { %1032 = vst [vmem:[#allocation2 + $0x70] sm:$0xff] %v1000_v12 }
 0x292   :  { %v1189_v60 = vpop.eup %1188 }
 0x293   :  { %v1001_v16 = vmul.f32 %v1189_v60, %v1627_v19  ;;  %v927_v17 = vpop.xlane.xlu0 %926 }
 0x294   :  { %1194 = vrcp.f32 %v927_v17 }
 0x295   :  { %1033 = vst [vmem:[#allocation2 + $0x78] sm:$0xff] %v1001_v16 }
 0x296   :  { %v1191_v1 = vpop.eup %1190 }
 0x297   :  { %v1002_v18 = vmul.f32 %v1191_v1, %v1630_v26  ;;  %v929_v21 = vpop.xlane.xlu1 %928 }
 0x298   :  { %1196 = vrcp.f32 %v929_v21 }
 0x299   :  { %1034 = vst [vmem:[#allocation2 + $0x80] sm:$0xff] %v1002_v18 }
 0x29a   :  { %v1193_v8 = vpop.eup %1192 }
 0x29b   :  { %v1003_v23 = vmul.f32 %v1193_v8, %v1633_v32  ;;  %v931_v24 = vpop.xlane.xlu0 %930 }
 0x29c   :  { %1198 = vrcp.f32 %v931_v24 }
 0x29d   :  { %1035 = vst [vmem:[#allocation2 + $0x88] sm:$0xff] %v1003_v23 }
 0x29e   :  { %v1195_v7 = vpop.eup %1194 }
 0x29f   :  { %v1004_v27 = vmul.f32 %v1195_v7, %v1636_v38  ;;  %v933_v28 = vpop.xlane.xlu1 %932 }
 0x2a0   :  { %1200 = vrcp.f32 %v933_v28 }
 0x2a1   :  { %1036 = vst [vmem:[#allocation2 + $0x90] sm:$0xff] %v1004_v27 }
 0x2a2   :  { %v1197_v19 = vpop.eup %1196 }
 0x2a3   :  { %v1005_v31 = vmul.f32 %v1197_v19, %v1639_v44  ;;  %v935_v33 = vpop.xlane.xlu0 %934 }
 0x2a4   :  { %1202 = vrcp.f32 %v935_v33 }
 0x2a5   :  { %1037 = vst [vmem:[#allocation2 + $0x98] sm:$0xff] %v1005_v31 }
 0x2a6   :  { %v1199_v26 = vpop.eup %1198 }
 0x2a7   :  { %v1006_v5 = vmul.f32 %v1199_v26, %v1642_v51  ;;  %v937_v34 = vpop.xlane.xlu1 %936 }
 0x2a8   :  { %1204 = vrcp.f32 %v937_v34 }
 0x2a9   :  { %1038 = vst [vmem:[#allocation2 + $0xa0] sm:$0xff] %v1006_v5 }
 0x2aa   :  { %v1201_v32 = vpop.eup %1200 }
 0x2ab   :  { %v1007_v36 = vmul.f32 %v1201_v32, %v1645_v57  ;;  %v939_v11 = vpop.xlane.xlu0 %938 }
 0x2ac   :  { %1206 = vrcp.f32 %v939_v11 }
 0x2ad   :  { %1039 = vst [vmem:[#allocation2 + $0xa8] sm:$0xff] %v1007_v36 }
 0x2ae   :  { %v1203_v38 = vpop.eup %1202 }
 0x2af   :  { %v1008_v39 = vmul.f32 %v1203_v38, %v1648_v63  ;;  %v941_v41 = vpop.xlane.xlu1 %940 }
 0x2b0   :  { %1208 = vrcp.f32 %v941_v41 }
 0x2b1   :  { %1040 = vst [vmem:[#allocation2 + $0xb0] sm:$0xff] %v1008_v39 }
 0x2b2   :  { %v1205_v44 = vpop.eup %1204 }
 0x2b3   :  { %v1009_v15 = vmul.f32 %v1205_v44, %v1651_v6  ;;  %v943_v42 = vpop.xlane.xlu0 %942 }
 0x2b4   :  { %1210 = vrcp.f32 %v943_v42 }
 0x2b5   :  { %1041 = vst [vmem:[#allocation2 + $0xb8] sm:$0xff] %v1009_v15 }
 0x2b6   :  { %v1207_v51 = vpop.eup %1206 }
 0x2b7   :  { %v1010_v43 = vmul.f32 %v1207_v51, %v1654_v14  ;;  %v945_v20 = vpop.xlane.xlu1 %944 }
 0x2b8   :  { %1212 = vrcp.f32 %v945_v20 }
 0x2b9   :  { %1042 = vst [vmem:[#allocation2 + $0xc0] sm:$0xff] %v1010_v43 }
 0x2ba   :  { %v1209_v57 = vpop.eup %1208 }
 0x2bb   :  { %v1011_v47 = vmul.f32 %v1209_v57, %v1657_v22  ;;  %v947_v48 = vpop.xlane.xlu0 %946 }
 0x2bc   :  { %1214 = vrcp.f32 %v947_v48 }
 0x2bd   :  { %1043 = vst [vmem:[#allocation2 + $0xc8] sm:$0xff] %v1011_v47 }
 0x2be   :  { %v1211_v63 = vpop.eup %1210 }
 0x2bf   :  { %v1012_v25 = vmul.f32 %v1211_v63, %v1660_v29  ;;  %v949_v49 = vpop.xlane.xlu1 %948 }
 0x2c0   :  { %1216 = vrcp.f32 %v949_v49 }
 0x2c1   :  { %1044 = vst [vmem:[#allocation2 + $0xd0] sm:$0xff] %v1012_v25 }
 0x2c2   :  { %v1213_v6 = vpop.eup %1212 }
 0x2c3   :  { %v1013_v52 = vmul.f32 %v1213_v6, %v1663_v37  ;;  %v951_v30 = vpop.xlane.xlu0 %950 }
 0x2c4   :  { %1218 = vrcp.f32 %v951_v30 }
 0x2c5   :  { %1045 = vst [vmem:[#allocation2 + $0xd8] sm:$0xff] %v1013_v52 }
 0x2c6   :  { %v1215_v14 = vpop.eup %1214 }
 0x2c7   :  { %v1014_v54 = vmul.f32 %v1215_v14, %v1666_v46  ;;  %v953_v56 = vpop.xlane.xlu1 %952 }
 0x2c8   :  { %1220 = vrcp.f32 %v953_v56 }
 0x2c9   :  { %1046 = vst [vmem:[#allocation2 + $0xe0] sm:$0xff] %v1014_v54 }
 0x2ca   :  { %v1217_v22 = vpop.eup %1216 }
 0x2cb   :  { %v1015_v35 = vmul.f32 %v1217_v22, %v1669_v53 }
 0x2cd   :  { %1047 = vst [vmem:[#allocation2 + $0xe8] sm:$0xff] %v1015_v35 }
 0x2ce   :  { %v1219_v29 = vpop.eup %1218 }
 0x2cf   :  { %v1016_v58 = vmul.f32 %v1219_v29, %v1672_v61 }
 0x2d1   :  { %1048 = vst [vmem:[#allocation2 + $0xf0] sm:$0xff] %v1016_v58 }
 0x2d2   :  { %v1221_v37 = vpop.eup %1220 }
 0x2d3   :  { %v1017_v59 = vmul.f32 %v1221_v37, %v1675_v3 }
 0x2d5   :  { %1049 = vst [vmem:[#allocation2 + $0xf8] sm:$0xff] %v1017_v59 }
 0x2d6   :  { %1233 = shalt.err (!%p1230_p4)
}
 0x2d7   :  { %s1234_s19 = scalar_lea.hbm %s1725_s3, 4096 }
 0x2d8   :  { %p1235_p5 = scmp.ne.s32.totalorder %s1725_s3, %s1234_s19  ;;  %p1238_p6 = scmp.lt.u32.totalorder %s1234_s19, %s1725_s3 }
 0x2da   :  { %p1240_p7 = pnand %p1238_p6, %p1235_p5 }
 0x2dc   :  { %1243 = shalt.err (!%p1240_p7)
}
 0x2dd   :  { %s1248_s24 = smov 128   ;;  %s1249_s25 = smov 8  }
 0x2de   :  { %1061 = dma.vmem_to_hbm [thread:$0]  %s1056_s15, 4096, %s1725_s3, [#allocation3], %s1248_s24, %s1248_s24, %s1249_s25  }
 0x2df   :  { %1244 = dma.done.wait [#allocation3], 4096  }
 0x2e0   :  { %1245 = vsyncadd [#allocation3], 4294963200 }
 0x2e1   :  { %1065 = vsyncpa [#allocation3], 1 }

</bundles_post_ra>
